<compile_context>
chip_gen: v7x
topology: tpu7x:2x2x1
jax: 0.10.0
libtpu: 0.0.40
codegen_flags: <defaults>
</compile_context>

<pallas_src>
import functools

import numpy as np
import jax
import jax.numpy as jnp
from jax.experimental import pallas as pl
from jax.experimental.pallas import tpu as pltpu

CHAR_PAD_IDX = 0
CHAR_EOS_IDX = 257
CHAR_VOCAB = 257        # nn.Embedding(257, char_embed_dim)
LANE = 128


def _round_up(x, m):
    return (x + m - 1) // m * m


def _bf16_round(x):
    return x.astype(jnp.bfloat16).astype(jnp.float32)


# ----------------------------------------------------------------------------- kernel
def _cte_kernel(code_ref, embs_ref, wt_ref, mask_ref, cbias_ref, *refs,
                chunk_bounds, mask_chunks, f_sub, highway_layers):
    # ---- unpack refs (order fixed by the wrapper) ----
    idx = 0
    hw = []
    for _ in range(highway_layers):
        hw.append((refs[idx], refs[idx + 1]))
        idx += 2
    pw_ref, pb_ref, sym_ref, out_ref = (refs[idx], refs[idx + 1],
                                        refs[idx + 2], refs[idx + 3])

    x = embs_ref[...]                                        # (TN, K_pad) bf16

    # ---- streamed block-Toeplitz conv with fused mask + max-over-time ----
    m = None
    for (c0, c1), need_mask in zip(chunk_bounds, mask_chunks):
        conv = jnp.dot(x, wt_ref[:, c0:c1],
                       preferred_element_type=jnp.float32)   # (TN, chunk) f32
        if need_mask:                                         # only trailing chunk(s)
            conv = conv + mask_ref[:, c0:c1]                  # -1e30 on invalid cols (f32)
        for b in range(0, c1 - c0, LANE):
            blk = conv[:, b:b + LANE]
            m = blk if m is None else jnp.maximum(m, blk)

    # cross-sub-slot max: time slots packed within each 128-lane block -> XLU
    shift = f_sub
    while shift < LANE:
        m = jnp.maximum(m, pltpu.roll(m, shift, 1))
        shift *= 2

    # per-channel bias once, after the max (bias constant across time slots)
    feat = jnp.maximum(m + cbias_ref[...], 0.0)               # relu, (TN, 128) f32

    # ---- highway layer(s): one merged 256-column matmul per layer ----
    for hww_ref, hwb_ref in hw:
        fb = feat.astype(hww_ref.dtype)                       # bf16 operands
        proj = jnp.dot(fb, hww_ref[...],
                       preferred_element_type=jnp.float32) + hwb_ref[...]
        px = jnp.maximum(proj[:, 0:LANE], 0.0)                # relu branch
        gate = jax.nn.sigmoid(proj[:, LANE:2 * LANE])         # gate branch
        feat = gate * feat + (1.0 - gate) * px

    # ---- final projection (padded to D_pad output lanes) ----
    out = jnp.dot(feat.astype(pw_ref.dtype), pw_ref[...],
                  preferred_element_type=jnp.float32) + pb_ref[...]

    # ---- pad / eos symbol masking (code: 0 normal, 1 pad, 2 eos) ----
    code = code_ref[...]                                      # (TN, 1) int32
    out = jnp.where(code == 1, 0.0, out)
    out = jnp.where(code == 2, sym_ref[...], out)             # symbol_embeddings[eos]

    out_ref[...] = out


# ----------------------------------------------------------------------------- param packing
def pack_params(params, *, filters, highway_layers, max_char_len, char_dim,
                word_dim):
    """Repack torch-style params into kernel-friendly, lane-dense layouts."""
    T, C = max_char_len, char_dim
    K = T * C
    K_pad = _round_up(K, LANE)
    F = sum(o for _, o in filters)
    assert F <= LANE, "total conv channels must fit in one 128-lane block"
    D_pad = _round_up(word_dim, LANE)

    # Sub-slot width: next divisor of 128 >= F (divisors of 128 are powers of
    # two), so 128 // F_sub whole time slots pack into one 128-lane block.
    F_sub = F
    while LANE % F_sub != 0:
        F_sub += 1
    slots_per_block = LANE // F_sub
    T_pad = _round_up(T, slots_per_block)
    n_blocks = T_pad // slots_per_block
    total_cols = n_blocks * LANE

    # -- block-Toeplitz conv weight (K_pad, total_cols).
    #    Column layout: time slot l -> block l//spb, sub-slot l%spb, channels
    #    of all filters concatenated.  Out-of-window / beyond-T slots keep a
    #    zero weight and get a -1e30 entry in `mask` so the max ignores them.
    wt = np.zeros((K_pad, total_cols), np.float32)
    mask = np.zeros((1, total_cols), np.float32)
    cbias = np.zeros((1, LANE), np.float32)

    ch = 0
    for (width, out_c), w, b in zip(filters, params["conv_w"], params["conv_b"]):
        w = np.asarray(w)               # (width, C, out_c)
        b = np.asarray(b)               # (1, out_c)
        L = T - width + 1
        for l in range(T_pad):
            blk, p = divmod(l, slots_per_block)
            col = blk * LANE + p * F_sub + ch
            if l < L:
                for s in range(width):
                    row = (l + s) * C
                    wt[row:row + C, col:col + out_c] = w[s]
            else:
                mask[0, col:col + out_c] = -1e30
        cbias[0, ch:ch + out_c] = b[0]
        ch += out_c

    # -- static chunking of the conv columns (>= 256 lanes per MXU dot).
    chunk_cols = min(2 * LANE, total_cols)
    bounds, mchunks = [], []
    s = 0
    while s < total_cols:
        e = min(s + chunk_cols, total_cols)
        bounds.append((s, e))
        mchunks.append(bool(np.any(mask[0, s:e] != 0.0)))
        s = e

    # -- highway: relu & gate halves merged into one (128, 256) weight.
    hw_w, hw_b = [], []
    for W, b in zip(params["hw_w"], params["hw_b"]):
        W = np.asarray(W)               # (F, 2F) pre-transposed (in, out)
        b = np.asarray(b)               # (1, 2F)
        Wm = np.zeros((LANE, 2 * LANE), np.float32)
        Wm[:F, :F] = W[:, :F]                     # relu half
        Wm[:F, LANE:LANE + F] = W[:, F:]          # gate half
        bm = np.zeros((1, 2 * LANE), np.float32)
        bm[0, :F] = b[0, :F]
        bm[0, LANE:LANE + F] = b[0, F:]
        hw_w.append(jnp.asarray(Wm, jnp.bfloat16))
        hw_b.append(jnp.asarray(bm, jnp.float32))

    # -- projection / symbol embeddings padded to D_pad lanes.
    pw = np.zeros((LANE, D_pad), np.float32)
    pw[:F, :word_dim] = np.asarray(params["proj_w"])
    pb = np.zeros((1, D_pad), np.float32)
    pb[0, :word_dim] = np.asarray(params["proj_b"])[0]
    sym = np.zeros((1, D_pad), np.float32)
    sym[0, :word_dim] = np.asarray(params["sym"])[0]          # eos symbol row

    return dict(
        emb=params["emb"].astype(jnp.bfloat16),               # (257, C) bf16
        wt=jnp.asarray(wt, jnp.bfloat16),
        mask=jnp.asarray(mask, jnp.float32),
        cbias=jnp.asarray(cbias, jnp.float32),
        hw_w=hw_w, hw_b=hw_b,
        pw=jnp.asarray(pw, jnp.bfloat16),
        pb=jnp.asarray(pb, jnp.float32),
        sym=jnp.asarray(sym, jnp.float32),
        meta=dict(K_pad=K_pad, F_sub=F_sub, D_pad=D_pad, T=T, C=C,
                  total_cols=total_cols, chunk_cols=chunk_cols,
                  chunk_bounds=tuple(bounds), mask_chunks=tuple(mchunks)))


# ----------------------------------------------------------------------------- wrapper
def _device_kind():
    try:
        return jax.devices()[0].device_kind.lower()
    except Exception:
        return ""


def _num_tensorcores():
    kind = _device_kind()
    # v5e / v6e expose a single TensorCore per chip; v4 / v5p / v7x expose two.
    if "lite" in kind or "v5e" in kind or "v6e" in kind:
        return 1
    return 2


def _vmem_limit_bytes(TN, K_pad, total_cols, D_pad, highway_layers, chunk_cols):
    # Double-buffered I/O windows + resident weights + live intermediates,
    # with a 2x safety factor, clamped to [8 MiB, 32 MiB].
    io = 2 * TN * K_pad * 2 + 2 * TN * LANE * 4 + 2 * TN * D_pad * 4
    weights = (K_pad * total_cols * 2 + total_cols * 4 + LANE * 4
               + highway_layers * (LANE * 2 * LANE * 2 + 2 * LANE * 4)
               + LANE * D_pad * 2 + 2 * D_pad * 4)
    live = (TN * chunk_cols * 4 + 4 * TN * LANE * 4
            + TN * 2 * LANE * 4 + TN * D_pad * 4)
    est = io + weights + live
    return int(min(max(2 * est, 8 * 1024 * 1024), 32 * 1024 * 1024))


def character_token_embedder(inp, packed, *, highway_layers, max_char_len,
                             word_dim, block_n=1024):
    """inp: (batch, seq, max_char_len) int32 char ids (char_inputs=True)."""
    B, S, T = inp.shape
    meta = packed["meta"]
    assert T == meta["T"]
    N = B * S
    K_pad, D_pad, C = meta["K_pad"], meta["D_pad"], meta["C"]

    chars = inp.reshape(N, T).astype(jnp.int32)
    c0 = chars[:, 0:1]                                        # (N, 1)
    pads = c0 == CHAR_PAD_IDX
    eos = c0 == CHAR_EOS_IDX
    chars = jnp.where(eos, jnp.int32(0), chars)               # chars[eos] = 0
    code = jnp.where(pads, 1, jnp.where(eos, 2, 0)).astype(jnp.int32)

    # Tiny (257, C) embedding gather stays in XLA; kernel gets a lane-dense
    # (N, T*C) bf16 slab.
    embs = packed["emb"][chars].reshape(N, T * C)             # (N, T*C) bf16
    if K_pad > T * C:
        embs = jnp.pad(embs, ((0, 0), (0, K_pad - T * C)))

    # Tile over the word axis; feed at least one grid step per TensorCore.
    cores = _num_tensorcores()
    TN = min(block_n, _round_up(N, 8))
    while cores > 1 and pl.cdiv(N, TN) < cores and TN > 8:
        TN = max(8, _round_up(TN // 2, 8))
    N_pad = _round_up(N, TN)
    if N_pad > N:
        embs = jnp.pad(embs, ((0, N_pad - N), (0, 0)))
        code = jnp.pad(code, ((0, N_pad - N), (0, 0)), constant_values=1)

    args = [code, embs, packed["wt"], packed["mask"], packed["cbias"]]
    for w, b in zip(packed["hw_w"], packed["hw_b"]):
        args += [w, b]
    args += [packed["pw"], packed["pb"], packed["sym"]]

    def _resident(a):
        return pl.BlockSpec(a.shape, lambda i, _nd=a.ndim: (0,) * _nd)

    in_specs = [
        pl.BlockSpec((TN, 1), lambda i: (i, 0)),              # pad/eos code
        pl.BlockSpec((TN, K_pad), lambda i: (i, 0)),          # char embeddings
    ] + [_resident(a) for a in args[2:]]                      # weights stay resident

    kernel = functools.partial(
        _cte_kernel,
        chunk_bounds=meta["chunk_bounds"],
        mask_chunks=meta["mask_chunks"],
        f_sub=meta["F_sub"],
        highway_layers=highway_layers)

    out = pl.pallas_call(
        kernel,
        out_shape=jax.ShapeDtypeStruct((N_pad, D_pad), jnp.float32),
        grid=(N_pad // TN,),
        in_specs=in_specs,
        out_specs=pl.BlockSpec((TN, D_pad), lambda i: (i, 0)),
        compiler_params=pltpu.CompilerParams(
            dimension_semantics=("parallel",),
            vmem_limit_bytes=_vmem_limit_bytes(
                TN, K_pad, meta["total_cols"], D_pad, highway_layers,
                meta["chunk_cols"])),
    )(*args)

    return out[:N, :word_dim].reshape(B, S, word_dim)


# ----------------------------------------------------------------------------- reference (pure JAX)
def reference(inp, params, *, filters, highway_layers, max_char_len, char_dim,
              word_dim):
    B, S, T = inp.shape
    N = B * S
    F = sum(o for _, o in filters)
    chars = inp.reshape(N, T).astype(jnp.int32)
    c0 = chars[:, 0:1]
    pads = c0 == CHAR_PAD_IDX
    eos = c0 == CHAR_EOS_IDX
    chars = jnp.where(eos, 0, chars)
    embs = params["emb"][chars]                               # (N, T, C) f32
    feats = []
    for (width, out_c), W, b in zip(filters, params["conv_w"], params["conv_b"]):
        L = T - width + 1
        acc = jnp.zeros((N, L, out_c), jnp.float32)
        for w in range(width):
            acc = acc + jnp.einsum("nlc,co->nlo", embs[:, w:w + L, :], W[w])
        acc = acc + b[None]
        feats.append(jnp.maximum(jnp.max(acc, axis=1), 0.0))
    x = jnp.concatenate(feats, -1)

    # Mirror the kernel's bf16 rounding of the matmul activations.
    def b16(v):
        return v.astype(jnp.bfloat16).astype(jnp.float32)

    for W, b in zip(params["hw_w"], params["hw_b"]):
        proj = b16(x) @ W + b
        px = jnp.maximum(proj[:, :F], 0.0)
        g = jax.nn.sigmoid(proj[:, F:])
        x = g * x + (1.0 - g) * px
    out = b16(x) @ params["proj_w"] + params["proj_b"]
    out = jnp.where(pads, 0.0, out)
    out = jnp.where(eos, params["sym"][0:1], out)
    return out.reshape(B, S, word_dim)


# ----------------------------------------------------------------------------- param init
def init_params(key, *, filters, highway_layers, char_dim, word_dim):
    F = sum(o for _, o in filters)
    ks = iter(jax.random.split(key, 32))

    def xavier(k, shape):
        fan_in, fan_out = shape[0], shape[-1]
        std = (2.0 / (fan_in + fan_out)) ** 0.5
        return std * jax.random.normal(k, shape, jnp.float32)

    # Matmul weights are bf16-rounded at init so the bf16 kernel path and the
    # f32 reference see identical operand values.
    emb = _bf16_round(xavier(next(ks), (CHAR_VOCAB, char_dim)))
    emb = emb.at[0].set(0.0)                                  # padding_idx=0 row zeroed
    sym = xavier(next(ks), (2, word_dim))                     # symbol_embeddings

    conv_w, conv_b = [], []
    for width, out_c in filters:
        # torch layout (out_c, C, width) -> pre-transposed (width, C, out_c)
        w = _bf16_round(0.1 * jax.random.normal(
            next(ks), (width, char_dim, out_c), jnp.float32))
        b = 0.1 * jax.random.normal(next(ks), (1, out_c), jnp.float32)
        conv_w.append(w)
        conv_b.append(b)

    hw_w, hw_b = [], []
    for _ in range(highway_layers):
        w = _bf16_round(xavier(next(ks), (F, 2 * F)))         # pre-transposed (in, out)
        b = jnp.concatenate([jnp.zeros((1, F), jnp.float32),  # bias[:F]=0, bias[F:]=1
                             jnp.ones((1, F), jnp.float32)], axis=-1)
        hw_w.append(w)
        hw_b.append(b)

    proj_w = _bf16_round(xavier(next(ks), (F, word_dim)))     # pre-transposed (in, out)
    proj_b = jnp.zeros((1, word_dim), jnp.float32)            # constant_(projection.bias, 0)

    return dict(emb=emb, sym=sym, conv_w=conv_w, conv_b=conv_b,
                hw_w=hw_w, hw_b=hw_b, proj_w=proj_w, proj_b=proj_b)


# ----------------------------------------------------------------------------- main
if __name__ == "__main__":
    BATCH, SEQ = 2, 8
    MAX_CHAR_LEN = 16
    CHAR_DIM = 8
    WORD_DIM = 32
    FILTERS = ((1, 16), (2, 16), (3, 32))   # last_dim = 64
    HIGHWAY_LAYERS = 1

    key = jax.random.PRNGKey(0)
    k_par, k_in = jax.random.split(key)
    params = init_params(k_par, filters=FILTERS, highway_layers=HIGHWAY_LAYERS,
                         char_dim=CHAR_DIM, word_dim=WORD_DIM)
    packed = pack_params(params, filters=FILTERS, highway_layers=HIGHWAY_LAYERS,
                         max_char_len=MAX_CHAR_LEN, char_dim=CHAR_DIM,
                         word_dim=WORD_DIM)

    # char_inputs=True path: input is (batch, seq, max_char_len) of char ids.
    inp = jax.random.randint(k_in, (BATCH, SEQ, MAX_CHAR_LEN), 1, 257, jnp.int32)
    inp = inp.at[0, 3].set(CHAR_PAD_IDX)      # a padded word (first char == 0)
    inp = inp.at[1, 5].set(CHAR_EOS_IDX)      # an EOS word (first char == 257)
    inp = inp.at[0, 6, 4:].set(0)             # a short word with trailing char padding

    out = character_token_embedder(inp, packed, highway_layers=HIGHWAY_LAYERS,
                                   max_char_len=MAX_CHAR_LEN, word_dim=WORD_DIM)
    out = jax.block_until_ready(out)

    ref = reference(inp, params, filters=FILTERS, highway_layers=HIGHWAY_LAYERS,
                    max_char_len=MAX_CHAR_LEN, char_dim=CHAR_DIM,
                    word_dim=WORD_DIM)

    assert out.shape == (BATCH, SEQ, WORD_DIM)
    assert jnp.allclose(out, ref, rtol=1e-3, atol=1e-3), "mismatch vs pure-JAX reference"

    print("KERNEL_OK")
</pallas_src>

<mosaic_0001>
module attributes {stable_mosaic.version = 11 : i64} {
  func.func @_cte_kernel(%arg0: i32, %arg1: memref<8x1xi32, #tpu.memory_space<vmem>>, %arg2: memref<8x128xbf16, #tpu.memory_space<vmem>>, %arg3: memref<128x1024xbf16, #tpu.memory_space<vmem>>, %arg4: memref<1x1024xf32, #tpu.memory_space<vmem>>, %arg5: memref<1x128xf32, #tpu.memory_space<vmem>>, %arg6: memref<128x256xbf16, #tpu.memory_space<vmem>>, %arg7: memref<1x256xf32, #tpu.memory_space<vmem>>, %arg8: memref<128x128xbf16, #tpu.memory_space<vmem>>, %arg9: memref<1x128xf32, #tpu.memory_space<vmem>>, %arg10: memref<1x128xf32, #tpu.memory_space<vmem>>, %arg11: memref<8x128xf32, #tpu.memory_space<vmem>>) attributes {dimension_semantics = [#tpu.dimension_semantics<parallel>], iteration_bounds = array<i64: 2>, scalar_prefetch = 0 : i64, scratch_operands = 0 : i64, tpu.core_type = #tpu.core_type<tc>, window_params = [{transform_indices = @transform_0, window_bounds = array<i64: 8, 1>}, {transform_indices = @transform_1, window_bounds = array<i64: 8, 128>}, {pipeline_mode = #tpu.pipeline_mode<synchronous>, transform_indices = @transform_2, window_bounds = array<i64: 128, 1024>}, {pipeline_mode = #tpu.pipeline_mode<synchronous>, transform_indices = @transform_3, window_bounds = array<i64: 1, 1024>}, {pipeline_mode = #tpu.pipeline_mode<synchronous>, transform_indices = @transform_4, window_bounds = array<i64: 1, 128>}, {pipeline_mode = #tpu.pipeline_mode<synchronous>, transform_indices = @transform_5, window_bounds = array<i64: 128, 256>}, {pipeline_mode = #tpu.pipeline_mode<synchronous>, transform_indices = @transform_6, window_bounds = array<i64: 1, 256>}, {pipeline_mode = #tpu.pipeline_mode<synchronous>, transform_indices = @transform_7, window_bounds = array<i64: 128, 128>}, {pipeline_mode = #tpu.pipeline_mode<synchronous>, transform_indices = @transform_8, window_bounds = array<i64: 1, 128>}, {pipeline_mode = #tpu.pipeline_mode<synchronous>, transform_indices = @transform_9, window_bounds = array<i64: 1, 128>}, {transform_indices = @transform_10, window_bounds = array<i64: 8, 128>}]} {
    %c0 = arith.constant 0 : index
    %c0_0 = arith.constant 0 : index
    %0 = vector.load %arg2[%c0, %c0_0] : memref<8x128xbf16, #tpu.memory_space<vmem>>, vector<8x128xbf16>
    %c0_1 = arith.constant 0 : index
    %c0_2 = arith.constant 0 : index
    %1 = vector.load %arg3[%c0_1, %c0_2] : memref<128x1024xbf16, #tpu.memory_space<vmem>>, vector<128x256xbf16>
    %cst = arith.constant dense<0.000000e+00> : vector<8x256xf32>
    %2 = tpu.matmul %0, %1, %cst {dimension_numbers = #tpu.dot_dimension_numbers<[1], [0], [0], [1], [0, 0, 1, 1], [], []>} : vector<8x128xbf16>, vector<128x256xbf16>, vector<8x256xf32> -> vector<8x256xf32>
    %3 = vector.extract_strided_slice %2 {offsets = [0, 0], sizes = [8, 128], strides = [1, 1]} : vector<8x256xf32> to vector<8x128xf32>
    %4 = vector.extract_strided_slice %2 {offsets = [0, 128], sizes = [8, 128], strides = [1, 1]} : vector<8x256xf32> to vector<8x128xf32>
    %5 = arith.maximumf %3, %4 : vector<8x128xf32>
    %c0_3 = arith.constant 0 : index
    %c256 = arith.constant 256 : index
    %6 = vector.load %arg3[%c0_3, %c256] : memref<128x1024xbf16, #tpu.memory_space<vmem>>, vector<128x256xbf16>
    %cst_4 = arith.constant dense<0.000000e+00> : vector<8x256xf32>
    %7 = tpu.matmul %0, %6, %cst_4 {dimension_numbers = #tpu.dot_dimension_numbers<[1], [0], [0], [1], [0, 0, 1, 1], [], []>} : vector<8x128xbf16>, vector<128x256xbf16>, vector<8x256xf32> -> vector<8x256xf32>
    %8 = vector.extract_strided_slice %7 {offsets = [0, 0], sizes = [8, 128], strides = [1, 1]} : vector<8x256xf32> to vector<8x128xf32>
    %9 = arith.maximumf %5, %8 : vector<8x128xf32>
    %10 = vector.extract_strided_slice %7 {offsets = [0, 128], sizes = [8, 128], strides = [1, 1]} : vector<8x256xf32> to vector<8x128xf32>
    %11 = arith.maximumf %9, %10 : vector<8x128xf32>
    %c0_5 = arith.constant 0 : index
    %c512 = arith.constant 512 : index
    %12 = vector.load %arg3[%c0_5, %c512] : memref<128x1024xbf16, #tpu.memory_space<vmem>>, vector<128x256xbf16>
    %cst_6 = arith.constant dense<0.000000e+00> : vector<8x256xf32>
    %13 = tpu.matmul %0, %12, %cst_6 {dimension_numbers = #tpu.dot_dimension_numbers<[1], [0], [0], [1], [0, 0, 1, 1], [], []>} : vector<8x128xbf16>, vector<128x256xbf16>, vector<8x256xf32> -> vector<8x256xf32>
    %14 = vector.extract_strided_slice %13 {offsets = [0, 0], sizes = [8, 128], strides = [1, 1]} : vector<8x256xf32> to vector<8x128xf32>
    %15 = arith.maximumf %11, %14 : vector<8x128xf32>
    %16 = vector.extract_strided_slice %13 {offsets = [0, 128], sizes = [8, 128], strides = [1, 1]} : vector<8x256xf32> to vector<8x128xf32>
    %17 = arith.maximumf %15, %16 : vector<8x128xf32>
    %c0_7 = arith.constant 0 : index
    %c768 = arith.constant 768 : index
    %18 = vector.load %arg3[%c0_7, %c768] : memref<128x1024xbf16, #tpu.memory_space<vmem>>, vector<128x256xbf16>
    %cst_8 = arith.constant dense<0.000000e+00> : vector<8x256xf32>
    %19 = tpu.matmul %0, %18, %cst_8 {dimension_numbers = #tpu.dot_dimension_numbers<[1], [0], [0], [1], [0, 0, 1, 1], [], []>} : vector<8x128xbf16>, vector<128x256xbf16>, vector<8x256xf32> -> vector<8x256xf32>
    %c0_9 = arith.constant 0 : index
    %c768_10 = arith.constant 768 : index
    %20 = vector.load %arg4[%c0_9, %c768_10] : memref<1x1024xf32, #tpu.memory_space<vmem>>, vector<1x256xf32>
    %21 = vector.broadcast %20 : vector<1x256xf32> to vector<8x256xf32>
    %22 = arith.addf %19, %21 : vector<8x256xf32>
    %23 = vector.extract_strided_slice %22 {offsets = [0, 0], sizes = [8, 128], strides = [1, 1]} : vector<8x256xf32> to vector<8x128xf32>
    %24 = arith.maximumf %17, %23 : vector<8x128xf32>
    %25 = vector.extract_strided_slice %22 {offsets = [0, 128], sizes = [8, 128], strides = [1, 1]} : vector<8x256xf32> to vector<8x128xf32>
    %26 = arith.maximumf %24, %25 : vector<8x128xf32>
    %c64_i32 = arith.constant 64 : i32
    %27 = tpu.dynamic_rotate %26 by %c64_i32 dim 1 : vector<8x128xf32>, i32 -> vector<8x128xf32>
    %28 = arith.maximumf %26, %27 : vector<8x128xf32>
    %c0_11 = arith.constant 0 : index
    %c0_12 = arith.constant 0 : index
    %29 = vector.load %arg5[%c0_11, %c0_12] : memref<1x128xf32, #tpu.memory_space<vmem>>, vector<1x128xf32>
    %30 = vector.broadcast %29 : vector<1x128xf32> to vector<8x128xf32>
    %31 = arith.addf %28, %30 : vector<8x128xf32>
    %cst_13 = arith.constant 0.000000e+00 : f32
    %32 = vector.broadcast %cst_13 : f32 to vector<8x128xf32>
    %33 = arith.maximumf %31, %32 : vector<8x128xf32>
    %34 = arith.truncf %33 : vector<8x128xf32> to vector<8x128xbf16>
    %c0_14 = arith.constant 0 : index
    %c0_15 = arith.constant 0 : index
    %35 = vector.load %arg6[%c0_14, %c0_15] : memref<128x256xbf16, #tpu.memory_space<vmem>>, vector<128x256xbf16>
    %cst_16 = arith.constant dense<0.000000e+00> : vector<8x256xf32>
    %36 = tpu.matmul %34, %35, %cst_16 {dimension_numbers = #tpu.dot_dimension_numbers<[1], [0], [0], [1], [0, 0, 1, 1], [], []>} : vector<8x128xbf16>, vector<128x256xbf16>, vector<8x256xf32> -> vector<8x256xf32>
    %c0_17 = arith.constant 0 : index
    %c0_18 = arith.constant 0 : index
    %37 = vector.load %arg7[%c0_17, %c0_18] : memref<1x256xf32, #tpu.memory_space<vmem>>, vector<1x256xf32>
    %38 = vector.broadcast %37 : vector<1x256xf32> to vector<8x256xf32>
    %39 = arith.addf %36, %38 : vector<8x256xf32>
    %40 = vector.extract_strided_slice %39 {offsets = [0, 0], sizes = [8, 128], strides = [1, 1]} : vector<8x256xf32> to vector<8x128xf32>
    %cst_19 = arith.constant 0.000000e+00 : f32
    %41 = vector.broadcast %cst_19 : f32 to vector<8x128xf32>
    %42 = arith.maximumf %40, %41 : vector<8x128xf32>
    %43 = vector.extract_strided_slice %39 {offsets = [0, 128], sizes = [8, 128], strides = [1, 1]} : vector<8x256xf32> to vector<8x128xf32>
    %44 = arith.negf %43 : vector<8x128xf32>
    %45 = math.exp %44 : vector<8x128xf32>
    %cst_20 = arith.constant 1.000000e+00 : f32
    %46 = vector.broadcast %cst_20 : f32 to vector<8x128xf32>
    %47 = arith.addf %46, %45 : vector<8x128xf32>
    %48 = arith.divf %46, %47 : vector<8x128xf32>
    %49 = arith.mulf %48, %33 : vector<8x128xf32>
    %cst_21 = arith.constant 1.000000e+00 : f32
    %50 = vector.broadcast %cst_21 : f32 to vector<8x128xf32>
    %51 = arith.subf %50, %48 : vector<8x128xf32>
    %52 = arith.mulf %51, %42 : vector<8x128xf32>
    %53 = arith.addf %49, %52 : vector<8x128xf32>
    %54 = arith.truncf %53 : vector<8x128xf32> to vector<8x128xbf16>
    %c0_22 = arith.constant 0 : index
    %c0_23 = arith.constant 0 : index
    %55 = vector.load %arg8[%c0_22, %c0_23] : memref<128x128xbf16, #tpu.memory_space<vmem>>, vector<128x128xbf16>
    %cst_24 = arith.constant dense<0.000000e+00> : vector<8x128xf32>
    %56 = tpu.matmul %54, %55, %cst_24 {dimension_numbers = #tpu.dot_dimension_numbers<[1], [0], [0], [1], [0, 0, 1, 1], [], []>} : vector<8x128xbf16>, vector<128x128xbf16>, vector<8x128xf32> -> vector<8x128xf32>
    %c0_25 = arith.constant 0 : index
    %c0_26 = arith.constant 0 : index
    %57 = vector.load %arg9[%c0_25, %c0_26] : memref<1x128xf32, #tpu.memory_space<vmem>>, vector<1x128xf32>
    %58 = vector.broadcast %57 : vector<1x128xf32> to vector<8x128xf32>
    %59 = arith.addf %56, %58 : vector<8x128xf32>
    %c0_27 = arith.constant 0 : index
    %c0_28 = arith.constant 0 : index
    %60 = vector.load %arg1[%c0_27, %c0_28] : memref<8x1xi32, #tpu.memory_space<vmem>>, vector<8x1xi32>
    %c1_i32 = arith.constant 1 : i32
    %61 = vector.broadcast %c1_i32 : i32 to vector<8x1xi32>
    %62 = arith.cmpi eq, %60, %61 : vector<8x1xi32>
    %cst_29 = arith.constant 0.000000e+00 : f32
    %63 = vector.shape_cast %62 : vector<8x1xi1> to vector<8x1xi1>
    %64 = vector.broadcast %63 : vector<8x1xi1> to vector<8x128xi1>
    %65 = vector.broadcast %cst_29 : f32 to vector<8x128xf32>
    %66 = arith.select %64, %65, %59 : vector<8x128xi1>, vector<8x128xf32>
    %c2_i32 = arith.constant 2 : i32
    %67 = vector.broadcast %c2_i32 : i32 to vector<8x1xi32>
    %68 = arith.cmpi eq, %60, %67 : vector<8x1xi32>
    %c0_30 = arith.constant 0 : index
    %c0_31 = arith.constant 0 : index
    %69 = vector.load %arg10[%c0_30, %c0_31] : memref<1x128xf32, #tpu.memory_space<vmem>>, vector<1x128xf32>
    %70 = vector.shape_cast %68 : vector<8x1xi1> to vector<8x1xi1>
    %71 = vector.broadcast %70 : vector<8x1xi1> to vector<8x128xi1>
    %72 = vector.shape_cast %69 : vector<1x128xf32> to vector<1x128xf32>
    %73 = vector.broadcast %72 : vector<1x128xf32> to vector<8x128xf32>
    %74 = arith.select %71, %73, %66 : vector<8x128xi1>, vector<8x128xf32>
    %c0_32 = arith.constant 0 : index
    %c0_33 = arith.constant 0 : index
    %75 = vector.load %arg11[%c0_32, %c0_33] : memref<8x128xf32, #tpu.memory_space<vmem>>, vector<8x128xf32>
    tpu.vector_store %arg11[%c0_32, %c0_33], %74 {strides = array<i32>} : memref<8x128xf32, #tpu.memory_space<vmem>>, vector<8x128xf32>,
    return
  }
  func.func @transform_0(%arg0: i32) -> (i32, i32) {
    %c0_i32 = arith.constant 0 : i32
    %c0_i32_0 = arith.constant 0 : i32
    return %arg0, %c0_i32 : i32, i32
  }
  func.func @transform_1(%arg0: i32) -> (i32, i32) {
    %c0_i32 = arith.constant 0 : i32
    %c0_i32_0 = arith.constant 0 : i32
    return %arg0, %c0_i32 : i32, i32
  }
  func.func @transform_2(%arg0: i32) -> (i32, i32) {
    %c0_i32 = arith.constant 0 : i32
    %c0_i32_0 = arith.constant 0 : i32
    %c0_i32_1 = arith.constant 0 : i32
    return %c0_i32, %c0_i32_0 : i32, i32
  }
  func.func @transform_3(%arg0: i32) -> (i32, i32) {
    %c0_i32 = arith.constant 0 : i32
    %c0_i32_0 = arith.constant 0 : i32
    %c0_i32_1 = arith.constant 0 : i32
    return %c0_i32, %c0_i32_0 : i32, i32
  }
  func.func @transform_4(%arg0: i32) -> (i32, i32) {
    %c0_i32 = arith.constant 0 : i32
    %c0_i32_0 = arith.constant 0 : i32
    %c0_i32_1 = arith.constant 0 : i32
    return %c0_i32, %c0_i32_0 : i32, i32
  }
  func.func @transform_5(%arg0: i32) -> (i32, i32) {
    %c0_i32 = arith.constant 0 : i32
    %c0_i32_0 = arith.constant 0 : i32
    %c0_i32_1 = arith.constant 0 : i32
    return %c0_i32, %c0_i32_0 : i32, i32
  }
  func.func @transform_6(%arg0: i32) -> (i32, i32) {
    %c0_i32 = arith.constant 0 : i32
    %c0_i32_0 = arith.constant 0 : i32
    %c0_i32_1 = arith.constant 0 : i32
    return %c0_i32, %c0_i32_0 : i32, i32
  }
  func.func @transform_7(%arg0: i32) -> (i32, i32) {
    %c0_i32 = arith.constant 0 : i32
    %c0_i32_0 = arith.constant 0 : i32
    %c0_i32_1 = arith.constant 0 : i32
    return %c0_i32, %c0_i32_0 : i32, i32
  }
  func.func @transform_8(%arg0: i32) -> (i32, i32) {
    %c0_i32 = arith.constant 0 : i32
    %c0_i32_0 = arith.constant 0 : i32
    %c0_i32_1 = arith.constant 0 : i32
    return %c0_i32, %c0_i32_0 : i32, i32
  }
  func.func @transform_9(%arg0: i32) -> (i32, i32) {
    %c0_i32 = arith.constant 0 : i32
    %c0_i32_0 = arith.constant 0 : i32
    %c0_i32_1 = arith.constant 0 : i32
    return %c0_i32, %c0_i32_0 : i32, i32
  }
  func.func @transform_10(%arg0: i32) -> (i32, i32) {
    %c0_i32 = arith.constant 0 : i32
    %c0_i32_0 = arith.constant 0 : i32
    return %arg0, %c0_i32 : i32, i32
  }
}

</mosaic_0001>

<bundles_post_ra>
// kernel: tpu_custom_call.1
= control target key start
LH: loop header
LB: loop body
LE: loop exit
PB: predicated region body
PF: predicated region fallthrough
CT: control target
= control target key end

     0   :  { %s2131_s0 = inlined_call_operand.vmem [shape: s32[16,1], index: 0, kind: input, shape index: {}]   ;;  %s2132_s1 = inlined_call_operand.vmem [shape: bf16[16,128], index: 1, kind: input, shape index: {}]   ;;  %s2133_s2 = inlined_call_operand.hbm [shape: bf16[128,1024], index: 2, kind: input, shape index: {}]   ;;  %s2134_s3 = inlined_call_operand.vmem [shape: f32[1,1024], index: 3, kind: input, shape index: {}]   ;;  %s2135_s4 = inlined_call_operand.vmem [shape: f32[1,128], index: 4, kind: input, shape index: {}]   ;;  %s2136_s5 = inlined_call_operand.hbm [shape: bf16[128,256], index: 5, kind: input, shape index: {}]   ;;  %s2137_s6 = inlined_call_operand.vmem [shape: f32[1,256], index: 6, kind: input, shape index: {}]   ;;  %s2138_s7 = inlined_call_operand.hbm [shape: bf16[128,128], index: 7, kind: input, shape index: {}]   ;;  %s2139_s8 = inlined_call_operand.vmem [shape: f32[1,128], index: 8, kind: input, shape index: {}]   ;;  %s2140_s9 = inlined_call_operand.vmem [shape: f32[1,128], index: 9, kind: input, shape index: {}]   ;;  %s2141_s10 = inlined_call_operand.hbm [shape: f32[16,128], index: 10, kind: output, shape index: {}]  }
   0x1   :  { %2150 = sst [smem:[#allocation17_spill]] %s2136_s5 }
   0x2   :  { %15 = vsyncpa [#allocation3], 0 }
   0x3   :  { %16 = vsyncpa [#allocation6], 0 }
   0x4   :  { %17 = vsyncpa [#allocation4], 0 }
   0x5   :  { %19 = vsyncpa [#allocation4 + $0x1], 0  ;;  %s1890_s13 = smov 0   ;;  %s1892_s14 = smov 0  }
   0x6   :  { %s1894_s15 = smov 0   ;;  %s1896_s16 = smov 0  }
   0x7 LB: > { %2151 = sst [smem:[#allocation12_spill]] %s1807_s13  ;;  %s1911_s17 = sadd.s32 4294967295, %s1819_s16   ;;  %s1819_s16 = sphi %s1896_s16, %s2171_s16   ;;  %s1815_s15 = sphi %s1894_s15, %s2173_s15   ;;  %s1811_s14 = sphi %s1892_s14, %s2175_s14   ;;  %s1807_s13 = sphi %s1890_s13, %s2174_s13  }
   0x8   : > { %2152 = sst [smem:[#allocation13_spill]] %s1815_s15  ;;  %s1409_s18 = sadd.s32 4294967294, %s1819_s16  }
   0x9   : > { %s1915_s19 = sadd.s32 1, %s1819_s16   ;;  %s252_s20 = sadd.s32 1, %s1815_s15 }
   0xa   : > { %2153 = sst [smem:[#allocation14_spill]] %s1915_s19  ;;  %s249_s21 = ssub.s32 %s1819_s16, %s1915_s19 }
   0xb   : > { %p262_p0 = scmp.ne.s32.totalorder %s1815_s15, %s1811_s14  ;;  %p250_p1 = scmp.eq.s32.totalorder %s249_s21, 0 }
   0xc   : > { %p263_p2 = scmp.eq.s32.totalorder %s1911_s17, 1  ;;  %p268_p3 = scmp.ne.s32.totalorder %s1811_s14, %s1807_s13 }
   0xd   : > { %p269_p4 = scmp.eq.s32.totalorder %s1409_s18, 1  ;;  %p1410_p7 = scmp.ge.s32.totalorder %s1819_s16, 1 }
   0xe   : > { %s1926_s22 = scalar_select %p250_p1, %s1815_s15, %s252_s20  }
   0xf   : > { %p1928_p5 = por %p263_p2, %p262_p0  ;;  %p1932_p6 = por %p269_p4, %p268_p3 }
  0x10   : > { %2154 = sst [smem:[#allocation15_spill]] %s1926_s22  ;;  %p276_p8 = scmp.lt.s32.totalorder %s1819_s16, 3 }
  0x11   : > { %s2155_s23 = scalar_select %p1928_p5, 1, 0 }
  0x12   : > { %s2156_s24 = scalar_select %p1932_p6, 1, 0 }
  0x13   : > { %p2142_p9 = scmp.eq.s32.totalorder %s1911_s17, 0  ;;  %p1939_p10 = pnand %p1410_p7, %p276_p8 }
  0x14   : > { %2157 = sst [smem:[#allocation16_spill]] %s2156_s24  ;;  %s1821_s26 = smov [#allocation5]  }
  0x15   : > { %s2158_s25 = scalar_select %p1939_p10, 1, 0 }
  0x16   : > { %s307_s27 = sshll.u32 %s1821_s26, 4  ;;  %p1561_p11 = pneg %p1939_p10  ;;  %s308_s27 = int_to_ptr.vmem [resolvable:$true] %s307_s27 }
  0x17   : > { %s1822_s29 = smov [#allocation2]   ;;  %s2160_s5 = sld [smem:[#allocation17_spill]] }
  0x18   : > { %p1947_p12 = pnand %p2142_p9, %p1561_p11  ;;  %s288_s30 = sshll.u32 %s1822_s29, 4  ;;  %s1951_s30 = int_to_ptr.vmem [resolvable:$true] %s288_s30 }
  0x1a   : > { %p1961_p0 = pneg %p1947_p12 }
  0x1d   : > { %s1665_s18 = scalar_lea.hbm %s2160_s5, 2048 }
  0x1e   : > { %p1666_p13 = scmp.ne.s32.totalorder %s2160_s5, %s1665_s18  ;;  %p1672_p3 = scmp.lt.u32.totalorder %s1665_s18, %s2160_s5 }
  0x20   : > { %p1668_p1 = pnand %p1961_p0, %p1666_p13 }
  0x22   : > { %p1669_p2 = pneg %p1668_p1 }
  0x24   : > { %p1674_p4 = pnand %p1672_p3, %p1669_p2 }
  0x26   : > { %1677 = shalt.err (!%p1674_p4)
}
  0x27   : > { %s1678_s11 = scalar_lea.vmem %s308_s27, 2048  ;;  %p1686_p9 = scmp.lt.s32.totalorder %s308_s27, %s308_s27 }
  0x28   : > { %p1679_p7 = scmp.ne.s32.totalorder %s308_s27, %s1678_s11  ;;  %p1687_p6 = scmp.lt.s32.totalorder %s1678_s11, %s1678_s11 }
  0x2a   : > { %p1681_p8 = pnand %p1679_p7, %p1961_p0  ;;  %p1688_p5 = por %p1687_p6, %p1686_p9 }
  0x2c   : > { %p1682_p11 = pneg %p1681_p8 }
  0x2e   : > { %p1689_p10 = pnand %p1688_p5, %p1682_p11 }
  0x30   : > { %1692 = shalt.err (!%p1689_p10)
}
  0x31   : > { %s1823_s12 = smov 128   ;;  %s1824_s20 = smov 8  }
  0x32   : > { %1567 = dma.hbm_to_vmem [thread:$0]  (!%p1947_p12), %s2160_s5, 2048, %s308_s27, [#allocation6], %s1823_s12, %s1823_s12, %s1824_s20  }
  0x33   : > { %s1693_s15 = scalar_lea.hbm %s2133_s2, 8192 }
  0x34   : > { %p1694_p13 = scmp.ne.s32.totalorder %s2133_s2, %s1693_s15  ;;  %p1700_p9 = scmp.lt.u32.totalorder %s1693_s15, %s2133_s2 }
  0x36   : > { %p1696_p5 = pnand %p1694_p13, %p1961_p0 }
  0x38   : > { %p1697_p6 = pneg %p1696_p5 }
  0x3a   : > { %p1702_p10 = pnand %p1700_p9, %p1697_p6 }
  0x3c   : > { %1705 = shalt.err (!%p1702_p10)
}
  0x3d   : > { %s1706_s27 = scalar_lea.vmem %s1951_s30, 8192  ;;  %p1714_p4 = scmp.lt.s32.totalorder %s1951_s30, %s1951_s30 }
  0x3e   : > { %p1707_p1 = scmp.ne.s32.totalorder %s1951_s30, %s1706_s27  ;;  %p1715_p7 = scmp.lt.s32.totalorder %s1706_s27, %s1706_s27 }
  0x40   : > { %p1709_p2 = pnand %p1707_p1, %p1961_p0  ;;  %p1716_p8 = por %p1715_p7, %p1714_p4 }
  0x42   : > { %p1710_p3 = pneg %p1709_p2 }
  0x44   : > { %p1717_p11 = pnand %p1716_p8, %p1710_p3 }
  0x46   : > { %1720 = shalt.err (!%p1717_p11)
}
  0x47   : > { %s1825_s19 = smov 512   ;;  %s1826_s13 = smov 32  }
  0x48   : > { %1564 = dma.hbm_to_vmem [thread:$0]  (!%p1947_p12), %s2133_s2, 8192, %s1951_s30, [#allocation3], %s1825_s19, %s1825_s19, %s1826_s13  }
  0x49   : > { %s1827_s12 = smov [#allocation7]   ;;  %s1721_s21 = scalar_lea.hbm %s2138_s7, 1024 }
  0x4a   : > { %s323_s20 = sshll.u32 %s1827_s12, 4  ;;  %p1722_p13 = scmp.ne.s32.totalorder %s2138_s7, %s1721_s21  ;;  %s324_s20 = int_to_ptr.vmem [resolvable:$true] %s323_s20 }
  0x4b   : > { %p1728_p9 = scmp.lt.u32.totalorder %s1721_s21, %s2138_s7 }
  0x4c   : > { %p1724_p5 = pnand %p1722_p13, %p1961_p0 }
  0x4e   : > { %p1725_p6 = pneg %p1724_p5 }
  0x50   : > { %p1730_p10 = pnand %p1728_p9, %p1725_p6 }
  0x52   : > { %1733 = shalt.err (!%p1730_p10)
}
  0x53   : > { %s1734_s30 = scalar_lea.vmem %s324_s20, 1024  ;;  %p1742_p4 = scmp.lt.s32.totalorder %s324_s20, %s324_s20 }
  0x54   : > { %p1735_p1 = scmp.ne.s32.totalorder %s324_s20, %s1734_s30  ;;  %p1743_p7 = scmp.lt.s32.totalorder %s1734_s30, %s1734_s30 }
  0x56   : > { %p1737_p2 = pnand %p1735_p1, %p1961_p0  ;;  %p1744_p8 = por %p1743_p7, %p1742_p4 }
  0x58   : > { %p1738_p3 = pneg %p1737_p2 }
  0x5a   : > { %p1745_p11 = pnand %p1744_p8, %p1738_p3 }
  0x5c   : > { %1748 = shalt.err (!%p1745_p11)
}
  0x5d   : > { %s1828_s19 = smov 64   ;;  %s1829_s13 = smov 4  }
  0x5e   : > { %1570 = dma.hbm_to_vmem [thread:$0]  (!%p1947_p12), %s2138_s7, 1024, %s324_s20, [#allocation6], %s1828_s19, %s1828_s19, %s1829_s13  }
  0x5f   : > { %p2162_p13 = scmp.ne.s32.totalorder %s2158_s25, 0 }
  0x60   : > { %p2163_p5 = scmp.eq.s32.totalorder (!%p2162_p13), %s1911_s17, 0 }
  0x61   : > { %359 = sbr.rel (%p2162_p13) target bundleno = 999 (0x3e7), region = 60 }
  0x68   : > { %1794 = dma.done.wait (%p2163_p5), [#allocation3], 8192   ;;  %p2164_p0 = pmov %p2163_p5 }
  0x6a   : > { %1796 = vsyncadd (%p2164_p0), [#allocation3], 4294959104  ;;  %p2165_p6 = pmov %p2164_p0 }
  0x6b   : > { %p2166_p9 = pmov %p2164_p0 }
  0x6c   : > { %1798 = dma.done.wait (%p2165_p6), [#allocation6], 3072  }
  0x6d   : > { %1800 = vsyncadd (%p2166_p9), [#allocation6], 4294964224  ;;  %v1830_v0 = vmov 0   ;;  %v418_v1 = vld [vmem:[#allocation2] sm:$0xff]  ;;  %v556_v3 = vld [vmem:[#allocation2 + $0x8] sm:$0xff]  ;;  %p408_p12 = scmp.lt.s32.totalorder %s1911_s17, 1 }
  0x6e   : > { %546 = vmatprep.mubr.bf16.mxu0 %v1830_v0  ;;  %684 = vmatprep.mubr.bf16.mxu1 %v1830_v0  ;;  %v419_v2 = vld [vmem:[#allocation2 + $0x20] sm:$0xff]  ;;  %v557_v5 = vld [vmem:[#allocation2 + $0x28] sm:$0xff]  ;;  %v695_v60 = vld [vmem:[#allocation2 + $0x10] sm:$0xff]  ;;  %s1831_s18 = smov 64   ;;  %vm1833_vm0 = vmmov 0   ;;  %s405_s5 = sand.u32 1, %s1811_s14  }
  0x6f   : > { %1627 = vset.pattern.permute.xlu0 %v1830_v0  ;;  %1628 = vset.pattern.permute.xlu1 %v1830_v0  ;;  %v1423_v4 = vcombine.high %v418_v1, %v419_v2  ;;  %v1422_v6 = vcombine.low %v418_v1, %v419_v2  ;;  %v420_v7 = vld [vmem:[#allocation2 + $0x40] sm:$0xff]  ;;  %v1439_v9 = vcombine.high %v556_v3, %v557_v5  ;;  %v558_v12 = vld [vmem:[#allocation2 + $0x48] sm:$0xff]  ;;  %s2036_s25 = scalar_select %p408_p12, %s1911_s17, 1  ;;  %v696_v61 = vld [vmem:[#allocation2 + $0x30] sm:$0xff] }
  0x70   : > { %v421_v8 = vld [vmem:[#allocation2 + $0x60] sm:$0xff]  ;;  %v1438_v10 = vcombine.low %v556_v3, %v557_v5  ;;  %v559_v13 = vld [vmem:[#allocation2 + $0x68] sm:$0xff]  ;;  %v834_v1 = vld [vmem:[#allocation2 + $0x18] sm:$0xff]  ;;  %s1515_s24 = sshll.u32 %s1911_s17, 7  ;;  %s1294_s17 = scalar_lea.sflag [#allocation4], %s405_s5 }
  0x71   : > { %v1425_v11 = vcombine.high %v420_v7, %v421_v8  ;;  %v422_v14 = vld [vmem:[#allocation2 + $0x80] sm:$0xff]  ;;  %514 = vmatprep.subr.bf16.mxu0 %v1423_v4  ;;  %v1441_v15 = vcombine.high %v558_v12, %v559_v13  ;;  %v560_v17 = vld [vmem:[#allocation2 + $0x88] sm:$0xff]  ;;  %652 = vmatprep.subr.bf16.mxu1 %v1439_v9  ;;  %v1424_v19 = vcombine.low %v420_v7, %v421_v8  ;;  %v835_v2 = vld [vmem:[#allocation2 + $0x38] sm:$0xff]  ;;  %s1421_s28 = sshll.u32 %s2036_s25, 2  ;;  %s1420_s11 = sshll.u32 %s2036_s25, 3 }
  0x72   : > { %v423_v16 = vld [vmem:[#allocation2 + $0xa0] sm:$0xff]  ;;  %v561_v18 = vld [vmem:[#allocation2 + $0xa8] sm:$0xff]  ;;  %515 = vmatpush1.bf16.msra.mxu0 %v1422_v6  ;;  %653 = vmatpush1.bf16.msra.mxu1 %v1438_v10  ;;  %v1440_v20 = vcombine.low %v558_v12, %v559_v13  ;;  %v697_v5 = vld [vmem:[#allocation2 + $0x50] sm:$0xff]  ;;  %s415_s12 = scalar_lea.vmem %s2132_s1, %s1421_s28  ;;  %v1455_v8 = vcombine.high %v695_v60, %v696_v61  ;;  %v1454_v13 = vcombine.low %v695_v60, %v696_v61  ;;  %s411_s19 = scalar_lea.vmem %s2131_s0, %s1420_s11 }
  0x73   : > { %516 = vmatprep.subr.bf16.mxu0 %v1425_v11  ;;  %v1427_v21 = vcombine.high %v422_v14, %v423_v16  ;;  %654 = vmatprep.subr.bf16.mxu1 %v1441_v15  ;;  %v1443_v22 = vcombine.high %v560_v17, %v561_v18  ;;  %v424_v23 = vld [vmem:[#allocation2 + $0xc0] sm:$0xff]  ;;  %v562_v25 = vld [vmem:[#allocation2 + $0xc8] sm:$0xff]  ;;  %v1426_v27 = vcombine.low %v422_v14, %v423_v16  ;;  %v698_v6 = vld [vmem:[#allocation2 + $0x70] sm:$0xff]  ;;  %s1419_s25 = sshll.u32 %s405_s5, 3  ;;  %s2089_s11 = scalar_lea.hbm %s2141_s10, %s1515_s24 }
  0x74   : > { %v425_v24 = vld [vmem:[#allocation2 + $0xe0] sm:$0xff]  ;;  %v563_v26 = vld [vmem:[#allocation2 + $0xe8] sm:$0xff]  ;;  %v1442_v28 = vcombine.low %v560_v17, %v561_v18  ;;  %v836_v9 = vld [vmem:[#allocation2 + $0x58] sm:$0xff]  ;;  %v1471_v11 = vcombine.high %v834_v1, %v835_v2  ;;  %v1470_v14 = vcombine.low %v834_v1, %v835_v2  ;;  %v1457_v15 = vcombine.high %v697_v5, %v698_v6  ;;  %p2167_p1 = scmp.ne.s32.totalorder %s2155_s23, 0  ;;  %s1834_s30 = smov [#allocation8]  }
  0x75   : > { %v1429_v29 = vcombine.high %v424_v23, %v425_v24  ;;  %v1445_v30 = vcombine.high %v562_v25, %v563_v26  ;;  %v426_v31 = vld [vmem:[#allocation2 + $0x100] sm:$0xff]  ;;  %v564_v33 = vld [vmem:[#allocation2 + $0x108] sm:$0xff]  ;;  %v1428_v35 = vcombine.low %v424_v23, %v425_v24  ;;  %v1444_v36 = vcombine.low %v562_v25, %v563_v26  ;;  %v837_v10 = vld [vmem:[#allocation2 + $0x78] sm:$0xff] }
  0x76   : > { %517 = vmatpush1.bf16.msra.mxu0 %v1424_v19  ;;  %655 = vmatpush1.bf16.msra.mxu1 %v1440_v20  ;;  %v427_v32 = vld [vmem:[#allocation2 + $0x120] sm:$0xff]  ;;  %v565_v34 = vld [vmem:[#allocation2 + $0x128] sm:$0xff]  ;;  %v1473_v16 = vcombine.high %v836_v9, %v837_v10  ;;  %v699_v17 = vld [vmem:[#allocation2 + $0x90] sm:$0xff] }
  0x77   : > { %518 = vmatprep.subr.bf16.mxu0 %v1427_v21  ;;  %656 = vmatprep.subr.bf16.mxu1 %v1443_v22  ;;  %v1431_v37 = vcombine.high %v426_v31, %v427_v32  ;;  %v1447_v38 = vcombine.high %v564_v33, %v565_v34  ;;  %v428_v39 = vld [vmem:[#allocation2 + $0x140] sm:$0xff]  ;;  %v566_v41 = vld [vmem:[#allocation2 + $0x148] sm:$0xff]  ;;  %v1430_v43 = vcombine.low %v426_v31, %v427_v32  ;;  %v700_v18 = vld [vmem:[#allocation2 + $0xb0] sm:$0xff] }
  0x78   : > { %v429_v40 = vld [vmem:[#allocation2 + $0x160] sm:$0xff]  ;;  %v567_v42 = vld [vmem:[#allocation2 + $0x168] sm:$0xff]  ;;  %v1446_v44 = vcombine.low %v564_v33, %v565_v34  ;;  %v838_v19 = vld [vmem:[#allocation2 + $0x98] sm:$0xff]  ;;  %v1456_v21 = vcombine.low %v697_v5, %v698_v6  ;;  %v1472_v22 = vcombine.low %v836_v9, %v837_v10  ;;  %v1459_v23 = vcombine.high %v699_v17, %v700_v18 }
  0x79   : > { %v1433_v45 = vcombine.high %v428_v39, %v429_v40  ;;  %v1449_v46 = vcombine.high %v566_v41, %v567_v42  ;;  %v430_v47 = vld [vmem:[#allocation2 + $0x180] sm:$0xff]  ;;  %v568_v49 = vld [vmem:[#allocation2 + $0x188] sm:$0xff]  ;;  %v1432_v51 = vcombine.low %v428_v39, %v429_v40  ;;  %v1448_v54 = vcombine.low %v566_v41, %v567_v42  ;;  %v839_v20 = vld [vmem:[#allocation2 + $0xb8] sm:$0xff] }
  0x7a   : > { %519 = vmatpush1.bf16.msra.mxu0 %v1426_v27  ;;  %657 = vmatpush1.bf16.msra.mxu1 %v1442_v28  ;;  %v431_v48 = vld [vmem:[#allocation2 + $0x1a0] sm:$0xff]  ;;  %v569_v50 = vld [vmem:[#allocation2 + $0x1a8] sm:$0xff]  ;;  %v1475_v24 = vcombine.high %v838_v19, %v839_v20  ;;  %v701_v25 = vld [vmem:[#allocation2 + $0xd0] sm:$0xff] }
  0x7b   : > { %520 = vmatprep.subr.bf16.mxu0 %v1429_v29  ;;  %658 = vmatprep.subr.bf16.mxu1 %v1445_v30  ;;  %v432_v52 = vld [vmem:[#allocation2 + $0x1c0] sm:$0xff]  ;;  %v1435_v55 = vcombine.high %v430_v47, %v431_v48  ;;  %v570_v56 = vld [vmem:[#allocation2 + $0x1c8] sm:$0xff]  ;;  %v1451_v58 = vcombine.high %v568_v49, %v569_v50  ;;  %v1434_v59 = vcombine.low %v430_v47, %v431_v48  ;;  %v702_v26 = vld [vmem:[#allocation2 + $0xf0] sm:$0xff] }
  0x7c   : > { %v433_v53 = vld [vmem:[#allocation2 + $0x1e0] sm:$0xff]  ;;  %v571_v57 = vld [vmem:[#allocation2 + $0x1e8] sm:$0xff]  ;;  %v1450_v62 = vcombine.low %v568_v49, %v569_v50  ;;  %v840_v27 = vld [vmem:[#allocation2 + $0xd8] sm:$0xff]  ;;  %v1458_v29 = vcombine.low %v699_v17, %v700_v18  ;;  %v1474_v30 = vcombine.low %v838_v19, %v839_v20  ;;  %v1461_v31 = vcombine.high %v701_v25, %v702_v26 }
  0x7d   : > { %v1437_v63 = vcombine.high %v432_v52, %v433_v53  ;;  %v1453_v3 = vcombine.high %v570_v56, %v571_v57  ;;  %v1436_v4 = vcombine.low %v432_v52, %v433_v53  ;;  %v1452_v7 = vcombine.low %v570_v56, %v571_v57  ;;  %v2042_v12 = vld [vmem:[%s415_s12] sm:$0xf]  ;;  %v841_v28 = vld [vmem:[#allocation2 + $0xf8] sm:$0xff]  ;;  %v703_v33 = vld [vmem:[#allocation2 + $0x110] sm:$0xff]  ;;  %s407_s12 = scalar_lea.vmem [#allocation8], %s1419_s25 }
  0x7e   : > { %521 = vmatpush1.bf16.msra.mxu0 %v1428_v35  ;;  %659 = vmatpush1.bf16.msra.mxu1 %v1444_v36  ;;  %v1477_v32 = vcombine.high %v840_v27, %v841_v28  ;;  %v704_v34 = vld [vmem:[#allocation2 + $0x130] sm:$0xff]  ;;  %v842_v35 = vld [vmem:[#allocation2 + $0x118] sm:$0xff]  ;;  %v1631_v5 = vld [vmem:[#allocation5 + $0x4] ss:$8 sps:$4 sm:$0xff]   ;;  %s1307_s20 = sshll.u32 %s407_s12, 4  ;;  %s2091_s20 = int_to_ptr.vmem [resolvable:$true] %s1307_s20 }
  0x7f   : > { %522 = vmatprep.subr.bf16.mxu0 %v1431_v37  ;;  %660 = vmatprep.subr.bf16.mxu1 %v1447_v38  ;;  %v843_v36 = vld [vmem:[#allocation2 + $0x138] sm:$0xff]  ;;  %v1460_v37 = vcombine.low %v701_v25, %v702_v26  ;;  %v1476_v38 = vcombine.low %v840_v27, %v841_v28  ;;  %v1463_v39 = vcombine.high %v703_v33, %v704_v34  ;;  %v705_v41 = vld [vmem:[#allocation2 + $0x150] sm:$0xff]  ;;  %v1635_v9 = vld [vmem:[#allocation5 + $0x20] ss:$8 sps:$4 sm:$0xff]   ;;  %v852_v27 = vlaneseq  ;;  %s1749_s27 = scalar_lea.vmem %s2091_s20, 128 }
  0x80   : > { %v1479_v40 = vcombine.high %v842_v35, %v843_v36  ;;  %v706_v42 = vld [vmem:[#allocation2 + $0x170] sm:$0xff]  ;;  %v847_v52 = vld [vmem:[#allocation2 + $0x1b8] sm:$0xff]  ;;  %p1750_p10 = scmp.ne.s32.totalorder %s2091_s20, %s1749_s27 }
  0x81   : > { %v1465_v47 = vcombine.high %v705_v41, %v706_v42  ;;  %v707_v49 = vld [vmem:[#allocation2 + $0x190] sm:$0xff]  ;;  %v1464_v53 = vcombine.low %v705_v41, %v706_v42  ;;  %v849_v60 = vld [vmem:[#allocation2 + $0x1f8] sm:$0xff]  ;;  %v2051_v28 = vshrl.u32 %v852_v27, 7 }
  0x82   : > { %523 = vmatpush1.bf16.msra.mxu0 %v1430_v43  ;;  %661 = vmatpush1.bf16.msra.mxu1 %v1446_v44  ;;  %v844_v43 = vld [vmem:[#allocation2 + $0x158] sm:$0xff]  ;;  %v708_v50 = vld [vmem:[#allocation2 + $0x1b0] sm:$0xff]  ;;  %p1751_p2 = pnand %p1750_p10, %p2167_p1 }
  0x83   : > { %524 = vmatprep.subr.bf16.mxu0 %v1433_v45  ;;  %662 = vmatprep.subr.bf16.mxu1 %v1449_v46  ;;  %v845_v44 = vld [vmem:[#allocation2 + $0x178] sm:$0xff]  ;;  %v1462_v45 = vcombine.low %v703_v33, %v704_v34  ;;  %v1478_v46 = vcombine.low %v842_v35, %v843_v36  ;;  %v709_v57 = vld [vmem:[#allocation2 + $0x1d0] sm:$0xff]  ;;  %v1466_v61 = vcombine.low %v707_v49, %v708_v50  ;;  %v858_v33 = vsub.s32 1, %v2051_v28 }
  0x84   : > { %v1481_v48 = vcombine.high %v844_v43, %v845_v44  ;;  %v1634_v6 = vld [vmem:[#allocation5 + $0x14] ss:$8 sps:$4 sm:$0xff]   ;;  %p1752_p3 = pneg %p1751_p2 }
  0x85   : > { %v1640_v10 = vld [vmem:[#allocation5 + $0x34] ss:$8 sps:$4 sm:$0xff]  }
  0x86   : > { %525 = vmatpush1.bf16.msra.mxu0 %v1432_v51  ;;  %663 = vmatpush1.bf16.msra.mxu1 %v1448_v54  ;;  %v846_v51 = vld [vmem:[#allocation2 + $0x198] sm:$0xff]  ;;  %v1480_v54 = vcombine.low %v844_v43, %v845_v44 }
  0x87   : > { %526 = vmatprep.subr.bf16.mxu0 %v1435_v55  ;;  %664 = vmatprep.subr.bf16.mxu1 %v1451_v58  ;;  %v1467_v55 = vcombine.high %v707_v49, %v708_v50  ;;  %v1483_v56 = vcombine.high %v846_v51, %v847_v52  ;;  %v710_v58 = vld [vmem:[#allocation2 + $0x1f0] sm:$0xff] }
  0x88   : > { %v1468_v2 = vcombine.low %v709_v57, %v710_v58  ;;  %v1652_v35 = vld [vmem:[#allocation5 + $0x74] ss:$8 sps:$4 sm:$0xff]  }
  0x8a   : > { %527 = vmatpush1.bf16.msra.mxu0 %v1434_v59  ;;  %665 = vmatpush1.bf16.msra.mxu1 %v1450_v62  ;;  %v848_v59 = vld [vmem:[#allocation2 + $0x1d8] sm:$0xff]  ;;  %v1482_v62 = vcombine.low %v846_v51, %v847_v52  ;;  %v1486_v52 = vld [vmem:[%s2135_s4] ss:$0 sm:$0xff] }
  0x8b   : > { %528 = vmatprep.subr.bf16.mxu0 %v1437_v63  ;;  %666 = vmatprep.subr.bf16.mxu1 %v1453_v3  ;;  %v1469_v63 = vcombine.high %v709_v57, %v710_v58  ;;  %v1485_v1 = vcombine.high %v848_v59, %v849_v60  ;;  %v1484_v3 = vcombine.low %v848_v59, %v849_v60  ;;  %v1653_v58 = vld [vmem:[#allocation7] sm:$0xff]   ;;  %v1832_v59 = vmov 0.0   ;;  %v1654_v60 = vld [vmem:[#allocation7 + $0x8] sm:$0xff]  }
  0x8e   : > { %529 = vmatpush1.bf16.msra.mxu0 %v1436_v4  ;;  %667 = vmatpush1.bf16.msra.mxu1 %v1452_v7  ;;  %v1629_v4 = vld [vmem:[#allocation5] ss:$8 sps:$4 sm:$0xff]   ;;  %v1632_v7 = vld [vmem:[#allocation5 + $0x10] ss:$8 sps:$4 sm:$0xff]  }
  0x8f   : > { %791 = vmatprep.subr.bf16.mxu0 %v1455_v8  ;;  %942 = vmatprep.subr.bf16.mxu1 %v1471_v11  ;;  %v1637_v8 = vld [vmem:[#allocation5 + $0x24] ss:$8 sps:$4 sm:$0xff]   ;;  %v1638_v11 = vld [vmem:[#allocation5 + $0x30] ss:$8 sps:$4 sm:$0xff]  }
  0x91   : > { %547 = vmatmul.mubr.bf16.vlgmr.msra.gmra.mrb[0].mxu0 %v2042_v12  ;;  %685 = vmatmul.mubr.bf16.vlgmr.msra.gmra.mrb[0].mxu1 %v2042_v12 }
  0x92   : > { %792 = vmatpush1.bf16.msra.mxu0 %v1454_v13  ;;  %943 = vmatpush1.bf16.msra.mxu1 %v1470_v14  ;;  %v1643_v13 = vld [vmem:[#allocation5 + $0x44] ss:$8 sps:$4 sm:$0xff]   ;;  %v1646_v14 = vld [vmem:[#allocation5 + $0x54] ss:$8 sps:$4 sm:$0xff]  }
  0x93   : > { %793 = vmatprep.subr.bf16.mxu0 %v1457_v15  ;;  %944 = vmatprep.subr.bf16.mxu1 %v1473_v16  ;;  %v1644_v15 = vld [vmem:[#allocation5 + $0x50] ss:$8 sps:$4 sm:$0xff]  }
  0x94   : > { %823 = vmatprep.mubr.bf16.mxu0 %v1830_v0  ;;  %974 = vmatprep.mubr.bf16.mxu1 %v1830_v0 }
  0x96   : > { %794 = vmatpush1.bf16.msra.mxu0 %v1456_v21  ;;  %945 = vmatpush1.bf16.msra.mxu1 %v1472_v22 }
  0x97   : > { %795 = vmatprep.subr.bf16.mxu0 %v1459_v23  ;;  %946 = vmatprep.subr.bf16.mxu1 %v1475_v24 }
  0x9a   : > { %796 = vmatpush1.bf16.msra.mxu0 %v1458_v29  ;;  %947 = vmatpush1.bf16.msra.mxu1 %v1474_v30  ;;  %v854_v29 = vsub.s32 0, %v2051_v28  ;;  %v850_v30 = vld [vmem:[%s2134_s3 + $0x6] sm:$0x3] }
  0x9b   : > { %797 = vmatprep.subr.bf16.mxu0 %v1461_v31  ;;  %948 = vmatprep.subr.bf16.mxu1 %v1477_v32  ;;  %v1649_v31 = vld [vmem:[#allocation5 + $0x64] ss:$8 sps:$4 sm:$0xff]   ;;  %v1647_v32 = vld [vmem:[#allocation5 + $0x60] ss:$8 sps:$4 sm:$0xff]   ;;  %v859_v41 = vrot.slane %v850_v30, %v858_v33 }
  0x9c   : > { %v855_v34 = vrot.slane %v850_v30, %v854_v29 }
  0x9e   : > { %798 = vmatpush1.bf16.msra.mxu0 %v1460_v37  ;;  %949 = vmatpush1.bf16.msra.mxu1 %v1476_v38  ;;  %v1650_v37 = vld [vmem:[#allocation5 + $0x70] ss:$8 sps:$4 sm:$0xff]  }
  0x9f   : > { %799 = vmatprep.subr.bf16.mxu0 %v1463_v39  ;;  %950 = vmatprep.subr.bf16.mxu1 %v1479_v40 }
  0xa2   : > { %800 = vmatpush1.bf16.msra.mxu0 %v1462_v45  ;;  %951 = vmatpush1.bf16.msra.mxu1 %v1478_v46 }
  0xa3   : > { %801 = vmatprep.subr.bf16.mxu0 %v1465_v47  ;;  %952 = vmatprep.subr.bf16.mxu1 %v1481_v48 }
  0xa6   : > { %802 = vmatpush1.bf16.msra.mxu0 %v1464_v53  ;;  %953 = vmatpush1.bf16.msra.mxu1 %v1480_v54 }
  0xa7   : > { %803 = vmatprep.subr.bf16.mxu0 %v1467_v55  ;;  %954 = vmatprep.subr.bf16.mxu1 %v1483_v56 }
  0xaa   : > { %804 = vmatpush1.bf16.msra.mxu0 %v1466_v61  ;;  %955 = vmatpush1.bf16.msra.mxu1 %v1482_v62  ;;  %v1655_v61 = vld [vmem:[#allocation7 + $0x10] sm:$0xff]   ;;  %v1656_v62 = vld [vmem:[#allocation7 + $0x18] sm:$0xff]  }
  0xab   : > { %805 = vmatprep.subr.bf16.mxu0 %v1469_v63  ;;  %956 = vmatprep.subr.bf16.mxu1 %v1485_v1  ;;  %v1657_v63 = vld [vmem:[#allocation7 + $0x20] sm:$0xff]   ;;  %v1658_v1 = vld [vmem:[#allocation7 + $0x28] sm:$0xff]  }
  0xae   : > { %806 = vmatpush1.bf16.msra.mxu0 %v1468_v2  ;;  %957 = vmatpush1.bf16.msra.mxu1 %v1484_v3  ;;  %v1659_v2 = vld [vmem:[#allocation7 + $0x30] sm:$0xff]   ;;  %v1660_v3 = vld [vmem:[#allocation7 + $0x38] sm:$0xff]  }
  0xaf   : > { %1106 = vmatprep.subr.bf16.mxu0 %v1631_v5  ;;  %1527 = vmatprep.subr.bf16.mxu1 %v1832_v59 }
  0xb1   : > { %824 = vmatmul.mubr.bf16.vlgmr.msra.gmra.mrb[4].mxu0 %v2042_v12  ;;  %975 = vmatmul.mubr.bf16.vlgmr.msra.gmra.mrb[4].mxu1 %v2042_v12  ;;  %v1641_v12 = vld [vmem:[#allocation5 + $0x40] ss:$8 sps:$4 sm:$0xff]  }
  0xb2   : > { %1138 = vmatprep.mubr.bf16.mxu0 %v1830_v0  ;;  %1107 = vmatpush1.bf16.msra.mxu0 %v1629_v4  ;;  %v1270_v4 = vld [vmem:[%s411_s19] sm:$0xff]  ;;  %s1753_s19 = sshll.u32 %s1834_s30, 4  ;;  %s1754_s19 = int_to_ptr.vmem [resolvable:$false] %s1753_s19 }
  0xb3   : > { %1108 = vmatprep.subr.bf16.mxu0 %v1634_v6  ;;  %1528 = vmatpush3.bf16.msra.mxu1 %v1653_v58  ;;  %vm1271_vm1 = vcmp.eq.s32.totalorder %v1270_v4, 1  ;;  %vm1278_vm2 = vcmp.eq.s32.totalorder %v1270_v4, 2  ;;  %s1755_s13 = scalar_lea.vmem %s1754_s19, 256  ;;  %p1756_p4 = scmp.lt.s32.totalorder %s2091_s20, %s1754_s19 }
  0xb4   : > { %1529 = vmatprep.subr.bf16.mxu1 %v1832_v59  ;;  %1543 = vmatprep.mubr.msk.bf16.mxu1 %vm1833_vm0, %v1832_v59  ;;  %v1272_v5 = vsel %vm1271_vm1, 1, %v1830_v0  ;;  %v1280_v6 = vsel %vm1278_vm2, 1, %v1830_v0  ;;  %p1757_p7 = scmp.lt.s32.totalorder %s1755_s13, %s1749_s27 }
  0xb5   : > { %1282 = vperm.xlu1 %1628, %v1280_v6  }
  0xb6   : > { %1109 = vmatpush1.bf16.msra.mxu0 %v1632_v7  ;;  %v1014_v7 = vld [vmem:[%s2137_s6] sm:$0x3]  ;;  %p1758_p8 = por %p1757_p7, %p1756_p4 }
  0xb7   : > { %1110 = vmatprep.subr.bf16.mxu0 %v1637_v8  ;;  %1530 = vmatpush3.bf16.msra.mxu1 %v1654_v60  ;;  %v1023_v8 = vrot.slane %v1014_v7, %v858_v33  ;;  %v1019_v0 = vrot.slane %v1014_v7, %v854_v29 }
  0xb8   : > { %1531 = vmatprep.subr.bf16.mxu1 %v1832_v59  ;;  %p1759_p11 = pnand %p1758_p8, %p1752_p3 }
  0xba   : > { %1111 = vmatpush1.bf16.msra.mxu0 %v1635_v9 }
  0xbb   : > { %1112 = vmatprep.subr.bf16.mxu0 %v1640_v10  ;;  %1532 = vmatpush3.bf16.msra.mxu1 %v1655_v61 }
  0xbc   : > { %1533 = vmatprep.subr.bf16.mxu1 %v1832_v59 }
  0xbe   : > { %1113 = vmatpush1.bf16.msra.mxu0 %v1638_v11 }
  0xbf   : > { %1114 = vmatprep.subr.bf16.mxu0 %v1643_v13  ;;  %1534 = vmatpush3.bf16.msra.mxu1 %v1656_v62 }
  0xc0   : > { %1535 = vmatprep.subr.bf16.mxu1 %v1832_v59 }
  0xc2   : > { %1115 = vmatpush1.bf16.msra.mxu0 %v1641_v12 }
  0xc3   : > { %1116 = vmatprep.subr.bf16.mxu0 %v1646_v14  ;;  %1536 = vmatpush3.bf16.msra.mxu1 %v1657_v63 }
  0xc4   : > { %1537 = vmatprep.subr.bf16.mxu1 %v1832_v59 }
  0xc6   : > { %1117 = vmatpush1.bf16.msra.mxu0 %v1644_v15 }
  0xc7   : > { %1118 = vmatprep.subr.bf16.mxu0 %v1649_v31  ;;  %1538 = vmatpush3.bf16.msra.mxu1 %v1658_v1  ;;  %v1513_v31 = vld [vmem:[%s2140_s9] ss:$0 sm:$0xff] }
  0xc8   : > { %1539 = vmatprep.subr.bf16.mxu1 %v1832_v59 }
  0xca   : > { %1119 = vmatpush1.bf16.msra.mxu0 %v1647_v32 }
  0xcb   : > { %1120 = vmatprep.subr.bf16.mxu0 %v1652_v35  ;;  %1540 = vmatpush3.bf16.msra.mxu1 %v1659_v2 }
  0xcc   : > { %1541 = vmatprep.subr.bf16.mxu1 %v1832_v59 }
  0xce   : > { %1121 = vmatpush1.bf16.msra.mxu0 %v1650_v37 }
  0xcf   : > { %1542 = vmatpush3.bf16.msra.mxu1 %v1660_v3 }
 0x134   : > { %v1283_v27 = vpop.permute.xlu1 %1282 }
 0x135   : > { %vm1284_vm4 = vcmp.eq.s32.totalorder %v1283_v27, 1 }
 0x164   : > { %v548_v16 = vpop.f32.mrb[0].mxu0  ;;  %v686_v17 = vpop.f32.mrb[0].mxu1 }
 0x165   : > { %v550_v18 = vpop.f32.mrb[1].mxu0  ;;  %v688_v20 = vpop.f32.mrb[1].mxu1 }
 0x166   : > { %v555_v19 = vmax.f32 %v548_v16, %v550_v18  ;;  %v552_v21 = vpop.f32.mrb[2].mxu0  ;;  %v690_v22 = vpop.f32.mrb[2].mxu1 }
 0x167   : > { %v553_v23 = vpop.f32.mrb[3].mxu0  ;;  %v691_v25 = vpop.f32.mrb[3].mxu1 }
 0x168   : > { %v693_v24 = vmax.f32 %v555_v19, %v686_v17 }
 0x16a   : > { %v694_v26 = vmax.f32 %v693_v24, %v688_v20 }
 0x184   : > { %v825_v36 = vpop.f32.mrb[4].mxu0  ;;  %v976_v39 = vpop.f32.mrb[4].mxu1 }
 0x185   : > { %v832_v38 = vmax.f32 %v694_v26, %v825_v36  ;;  %v827_v40 = vpop.f32.mrb[5].mxu0  ;;  %v977_v42 = vadd.f32 %v976_v39, %v855_v34  ;;  %v978_v43 = vpop.f32.mrb[5].mxu1  ;;  %v1504_v26 = vld [vmem:[%s2139_s8] ss:$0 sm:$0xff] }
 0x186   : > { %v829_v44 = vpop.f32.mrb[6].mxu0  ;;  %v980_v46 = vpop.f32.mrb[6].mxu1  ;;  %v979_v50 = vadd.f32 %v978_v43, %v859_v41 }
 0x187   : > { %v833_v45 = vmax.f32 %v832_v38, %v827_v40  ;;  %v830_v47 = vpop.f32.mrb[7].mxu0  ;;  %v981_v48 = vpop.f32.mrb[7].mxu1 }
 0x189   : > { %v983_v49 = vmax.f32 %v833_v45, %v977_v42 }
 0x18b   : > { %v984_v51 = vmax.f32 %v983_v49, %v979_v50 }
 0x18d   : > { %985 = vrot.lane.b32.xlu0 %v984_v51, %s1831_s18 }
 0x191   : > { %1274 = vperm.xlu0 %1627, %v1272_v5  }
 0x1ff   : > { %v986_v53 = vpop.permute.xlu0 %985 }
 0x200   : > { %v987_v54 = vmax.f32 %v984_v51, %v986_v53 }
 0x202   : > { %v995_v55 = vadd.f32 %v1486_v52, %v987_v54 }
 0x204   : > { %v996_v56 = vmax.f32 %v995_v55, 0.0 }
 0x206   : > { %v997_v57 = vpack.c.bf16 %v996_v56, %v996_v56 }
 0x208   : > { %1139 = vmatmul.mubr.bf16.vlgmr.msra.gmra.mrb[8].mxu0 %v997_v57 }
 0x210   : > { %v1275_v25 = vpop.permute.xlu0 %1274 }
 0x211   : > { %vm1276_vm3 = vcmp.eq.s32.totalorder %v1275_v25, 1 }
 0x2db   : > { %v1140_v9 = vpop.f32.mrb[8].mxu0 }
 0x2dc   : > { %v1142_v10 = vpop.f32.mrb[9].mxu0  ;;  %v1141_v17 = vadd.f32 %v1140_v9, %v1019_v0 }
 0x2dd   : > { %v1143_v11 = vadd.f32 %v1142_v10, %v1023_v8  ;;  %v1144_v13 = vpop.f32.mrb[10].mxu0 }
 0x2de   : > { %v1145_v12 = vpop.f32.mrb[11].mxu0  ;;  %v1147_v19 = vmax.f32 %v1141_v17, 0.0 }
 0x2df   : > { %v1503_v14 = vmul.f32 -1.442695, %v1143_v11 }
 0x2e1   : > { %1661 = vpow2.f32 %v1503_v14 }
 0x2eb   : > { %v1662_v15 = vpop.eup %1661 }
 0x2ec   : > { %v1151_v16 = vadd.f32 1.0, %v1662_v15 }
 0x2ee   : > { %1663 = vrcp.f32 %v1151_v16 }
 0x2f8   : > { %v1664_v18 = vpop.eup %1663 }
 0x2f9   : > { %v1155_v20 = vsub.f32 1.0, %v1664_v18  ;;  %v1154_v21 = vmul.f32 %v1664_v18, %v996_v56 }
 0x2fb   : > { %v1156_v22 = vmul.f32 %v1155_v20, %v1147_v19 }
 0x2fd   : > { %v1157_v23 = vadd.f32 %v1156_v22, %v1154_v21 }
 0x2ff   : > { %v1158_v24 = vpack.c.bf16 %v1157_v23, %v1157_v23 }
 0x301   : > { %1544 = vmatmul.mubr.bf16.vlgmr.msra.gmra.mrb[8].mxu1 %v1158_v24 }
 0x3d4   : > { %v1264_v28 = vpop.f32.mrb[8].mxu1 }
 0x3d5   : > { %v1265_v29 = vadd.f32 %v1504_v26, %v1264_v28  ;;  %v1545_v30 = vpop.f32.mrb[9].mxu1 }
 0x3d6   : > { %v1267_v32 = vpop.f32.mrb[10].mxu1 }
 0x3d7   : > { %v1277_v33 = vsel %vm1276_vm3, 0.0, %v1265_v29  ;;  %v1546_v34 = vpop.f32.mrb[11].mxu1 }
 0x3d8   : > { %v1291_v35 = vsel %vm1284_vm4, %v1513_v31, %v1277_v33 }
 0x3d9   : > { %1292 = vst [vmem:[%s407_s12] sm:$0xff] %v1291_v35 }
 0x3da   : > { %1762 = shalt.err (!%p1759_p11)
}
 0x3db   : > { %s1763_s15 = scalar_lea.hbm %s2089_s11, 128  ;;  %s1767_s28 = scalar_lea.hbm %s2141_s10, 256 }
 0x3dc   : > { %p1764_p13 = scmp.ne.s32.totalorder %s2089_s11, %s1763_s15  ;;  %p1768_p6 = scmp.lt.u32.totalorder %s2089_s11, %s2141_s10 }
 0x3dd   : > { %p1769_p9 = scmp.lt.u32.totalorder %s1767_s28, %s1763_s15  ;;  %p1771_p10 = scmp.lt.u32.totalorder %s1763_s15, %s2089_s11 }
 0x3de   : > { %p1765_p5 = pnand %p1764_p13, %p2167_p1 }
 0x3df   : > { %p1770_p12 = por %p1769_p9, %p1768_p6 }
 0x3e0   : > { %p1766_p0 = pneg %p1765_p5 }
 0x3e1   : > { %p1772_p2 = por %p1771_p10, %p1770_p12 }
 0x3e3   : > { %p1773_p3 = pnand %p1772_p2, %p1766_p0 }
 0x3e5   : > { %1776 = shalt.err (!%p1773_p3)
}
 0x3e6   : > { %1559 = dma.vmem_to_hbm [thread:$0]  (%p2167_p1), %s2091_s20, 128, %s2089_s11, %s1294_s17  }
 0x3e7 PF: > { %s2168_s12 = sld [smem:[#allocation12_spill]]  ;;  %s2169_s22 = sld [smem:[#allocation16_spill]] }
 0x3e8   : > { %p1581_p4 = scmp.ge.s32.totalorder %s1819_s16, 2 }
 0x3ed   : > { %s1319_s18 = sand.u32 1, %s2168_s12   ;;  %p2170_p7 = scmp.ne.s32.totalorder %s2169_s22, 0 }
 0x3ee   : > { %s1320_s21 = scalar_lea.sflag [#allocation4], %s1319_s18 }
 0x3ef   : > { %p1572_p8 = pnand %p1581_p4, %p2170_p7 }
 0x3f1   : > { %1802 = dma.done.wait (!%p1572_p8), %s1320_s21, 128  }
 0x3f2   : > { %1804 = vsyncadd (!%p1572_p8), %s1320_s21, 4294967168  ;;  %s2171_s16 = sld [smem:[#allocation14_spill]]  ;;  %s2172_s29 = sld [smem:[#allocation13_spill]] }
 0x3f3   : > { %s2173_s15 = sld [smem:[#allocation15_spill]]  ;;  %s2174_s13 = smov %s1811_s14 }
 0x3f8   : > { %p22_p11 = scmp.ge.s32.totalorder %s2171_s16, 4   ;;  %s2175_s14 = smov %s2172_s29 }
 0x3fa   :  { %24 = sbr.rel (!%p22_p11) target bundleno = 7 (0x7), region = 111 }
 0x401   :  { %1325 = vsyncpa [#allocation3], 1 }
 0x402   :  { %1327 = vsyncpa [#allocation3 + $0x1], 1 }
 0x403   :  { %1328 = vsyncpa [#allocation6], 1 }
 0x404   :  { %1329 = vsyncpa [#allocation4], 1 }
 0x405   :  { %1331 = vsyncpa [#allocation4 + $0x1], 1 }

</bundles_post_ra>
